<compile_context>
chip_gen: v7x
topology: tpu7x:2x2x1
jax: 0.10.0
libtpu: 0.0.40
codegen_flags: <defaults>
</compile_context>

<pallas_src>
import functools
import math

import jax
import jax.numpy as jnp
from jax.experimental import pallas as pl
from jax.experimental.pallas import tpu as pltpu


# ----------------------------- in-kernel helpers ----------------------------

def _dot(a, b):
    """MXU matmul: bf16 operands (weights are pre-cast on host), f32 accumulation."""
    return jnp.dot(a.astype(jnp.bfloat16), b.astype(jnp.bfloat16),
                   preferred_element_type=jnp.float32)


def _ln(x, g, b, eps=1e-5):
    mean = jnp.mean(x, axis=-1, keepdims=True)
    var = jnp.mean((x - mean) ** 2, axis=-1, keepdims=True)
    return (x - mean) * jax.lax.rsqrt(var + eps) * g + b


# ----------------------------- Pallas kernels ------------------------------

def _mm_act_kernel(x_ref, w_ref, b_ref, o_ref, *, act):
    y = _dot(x_ref[...], w_ref[...]) + b_ref[...]
    if act == "relu":
        y = jnp.maximum(y, 0.0)
    o_ref[...] = y


def _double_mm_kernel(x_ref, w1_ref, b1_ref, w2_ref, b2_ref, o_ref):
    # fused: subsampling fc (flattened conv feats -> D) + encoder fc (D -> D)
    y = _dot(x_ref[...], w1_ref[...]) + b1_ref[...]
    o_ref[...] = _dot(y, w2_ref[...]) + b2_ref[...]


def _block_kernel(x_ref, kb_ref,
                  f1g, f1b, f1w1, f1b1, f1w2, f1b2,
                  mg, mb, wqkv, bqkv, wo, bo,
                  cg, cb, pw1w, pw1b, dww, dwb, c2g, c2b, pw2w, pw2b,
                  f2g, f2b, f2w1, f2b1, f2w2, f2b2,
                  lfg, lfb,
                  *rest,
                  batch, seq, num_heads, num_prev, ksize, has_adapter):
    """One fused causal-Conformer block on a (B*T, D) activation slab."""
    if has_adapter:
        wd, bd, wu, bu, o_ref, qkv_s, attn_s, glu_s, pad_s, conv_s = rest
    else:
        o_ref, qkv_s, attn_s, glu_s, pad_s, conv_s = rest

    T, K, H = seq, ksize, num_heads
    x = x_ref[...]                                     # (B*T, D) f32
    D = x.shape[1]
    Dh = D // H

    # ---------------- FF1 (Macaron half) ----------------
    y = _ln(x, f1g[...], f1b[...])
    h = _dot(y, f1w1[...]) + f1b1[...]
    h = h * jax.nn.sigmoid(h)                          # SiLU
    x = x + 0.5 * (_dot(h, f1w2[...]) + f1b2[...])

    # ---------------- causal-window MHSA ----------------
    y = _ln(x, mg[...], mb[...])
    qkv_s[...] = _dot(y, wqkv[...]) + bqkv[...]        # fused QKV: (B*T, 3D)

    ti = jax.lax.broadcasted_iota(jnp.int32, (T, T), 0)
    tj = jax.lax.broadcasted_iota(jnp.int32, (T, T), 1)
    win_bias = jnp.where((tj <= ti) & ((ti - tj) <= num_prev), 0.0, -1e9)

    scale = 1.0 / math.sqrt(Dh)
    for b in range(batch):
        bias_b = win_bias + kb_ref[pl.ds(b, 1), :]     # (T,T) + (1,T) key-length bias
        r = b * T
        for hh in range(H):
            q = qkv_s[pl.ds(r, T), pl.ds(hh * Dh, Dh)]
            k = qkv_s[pl.ds(r, T), pl.ds(D + hh * Dh, Dh)]
            v = qkv_s[pl.ds(r, T), pl.ds(2 * D + hh * Dh, Dh)]
            s = _dot(q, k.T) * scale + bias_b
            s = s - jnp.max(s, axis=-1, keepdims=True)
            p = jnp.exp(s)
            p = p * pl.reciprocal(jnp.sum(p, axis=-1, keepdims=True), approx=True)
            attn_s[pl.ds(r, T), pl.ds(hh * Dh, Dh)] = _dot(p, v)
    # single wide out-projection over all heads / all batch rows
    x = x + _dot(attn_s[...], wo[...]) + bo[...]

    # ---------------- causal conv module ----------------
    y = _ln(x, cg[...], cb[...])
    y = _dot(y, pw1w[...]) + pw1b[...]                 # (B*T, 2C)
    C = y.shape[1] // 2
    glu_s[...] = y[:, :C] * jax.nn.sigmoid(y[:, C:])   # GLU

    Tp = T + K - 1
    for b in range(batch):
        r, pr = b * T, b * Tp
        pad_s[pl.ds(pr, K - 1), :] = jnp.zeros((K - 1, C), jnp.float32)  # only pad rows
        pad_s[pl.ds(pr + K - 1, T), :] = glu_s[pl.ds(r, T), :]
        acc = jnp.zeros((T, C), jnp.float32)
        for kk in range(K):                            # causal depthwise taps
            acc = acc + pad_s[pl.ds(pr + kk, T), :] * dww[pl.ds(kk, 1), :]
        conv_s[pl.ds(r, T), :] = acc
    z = conv_s[...] + dwb[...]
    z = _ln(z, c2g[...], c2b[...])
    z = z * jax.nn.sigmoid(z)                          # SiLU
    x = x + _dot(z, pw2w[...]) + pw2b[...]

    # ---------------- FF2 (Macaron half) ----------------
    y = _ln(x, f2g[...], f2b[...])
    h = _dot(y, f2w1[...]) + f2b1[...]
    h = h * jax.nn.sigmoid(h)
    x = x + 0.5 * (_dot(h, f2w2[...]) + f2b2[...])

    # ------------- final LN (+ after-LN adapter bottleneck) -------------
    x = _ln(x, lfg[...], lfb[...])
    if has_adapter:
        a = jnp.maximum(_dot(x, wd[...]) + bd[...], 0.0)
        x = x + _dot(a, wu[...]) + bu[...]
    o_ref[...] = x


# ------------------------------ kernel wrappers ------------------------------

def matmul_act(x2d, w, b, act="none"):
    """Single-invocation (whole arrays in VMEM) matmul + optional activation."""
    M = x2d.shape[0]
    N = w.shape[1]
    return pl.pallas_call(
        functools.partial(_mm_act_kernel, act=act),
        out_shape=jax.ShapeDtypeStruct((M, N), jnp.float32),
    )(x2d, w, b)


def double_mm(x2d, w1, b1, w2, b2):
    M = x2d.shape[0]
    N = w2.shape[1]
    return pl.pallas_call(
        _double_mm_kernel,
        out_shape=jax.ShapeDtypeStruct((M, N), jnp.float32),
    )(x2d, w1, b1, w2, b2)


def conformer_block_call(x2, key_bias, p, *, num_heads, num_prev, batch, seq):
    """One fused pallas_call for an entire conformer block. x2: (B*T, D)."""
    M, D = x2.shape
    K, C = p["conv"]["dw_w"].shape
    has_adapter = "adapter" in p

    ff1, mha, conv, ff2 = p["ff1"], p["mha"], p["conv"], p["ff2"]
    args = [x2, key_bias,
            ff1["g"], ff1["b"], ff1["w1"], ff1["b1"], ff1["w2"], ff1["b2"],
            mha["g"], mha["b"], mha["wqkv"], mha["bqkv"], mha["wo"], mha["bo"],
            conv["g"], conv["b"], conv["pw1_w"], conv["pw1_b"],
            conv["dw_w"], conv["dw_b"], conv["g2"], conv["b2"],
            conv["pw2_w"], conv["pw2_b"],
            ff2["g"], ff2["b"], ff2["w1"], ff2["b1"], ff2["w2"], ff2["b2"],
            p["ln_f_g"], p["ln_f_b"]]
    if has_adapter:
        a = p["adapter"]
        args += [a["wd"], a["bd"], a["wu"], a["bu"]]

    return pl.pallas_call(
        functools.partial(_block_kernel, batch=batch, seq=seq,
                          num_heads=num_heads, num_prev=num_prev,
                          ksize=K, has_adapter=has_adapter),
        out_shape=jax.ShapeDtypeStruct((M, D), jnp.float32),
        scratch_shapes=[
            pltpu.VMEM((M, 3 * D), jnp.float32),                    # fused QKV
            pltpu.VMEM((M, D), jnp.float32),                        # per-head attn outputs
            pltpu.VMEM((M, C), jnp.float32),                        # GLU output
            pltpu.VMEM((batch * (seq + K - 1), C), jnp.float32),    # causal left pad
            pltpu.VMEM((M, C), jnp.float32),                        # depthwise-conv output
        ],
    )(*args)


# ------------------------------ model (glue) -------------------------------

def conv2d_relu_im2col(x, wmat, b, k, stride):
    """NCHW conv, no padding; im2col (XLA glue) + one Pallas matmul+ReLU."""
    # TODO(synk): the strided-slice patch extraction is XLA, not Pallas; a
    # gather-style Pallas conv would remove the intermediate, but the
    # subsampling front-end is tiny compared to the conformer stack.
    B, Cin, H, W = x.shape
    Ho = (H - k) // stride + 1
    Wo = (W - k) // stride + 1
    patches = []
    for i in range(k):
        for j in range(k):
            patches.append(x[:, :, i:i + stride * (Ho - 1) + 1:stride,
                               j:j + stride * (Wo - 1) + 1:stride])
    cols = jnp.stack(patches, axis=2)                               # (B,Cin,k*k,Ho,Wo)
    cols = cols.transpose(0, 3, 4, 1, 2).reshape(B * Ho * Wo, Cin * k * k)
    y = matmul_act(cols, wmat, b, act="relu")
    cout = wmat.shape[1]
    return y.reshape(B, Ho, Wo, cout).transpose(0, 3, 1, 2)         # back to NCHW


# TODO(synk): is_timewise_ln=False variant (normalization over the time axis)
# not implemented; standard per-frame feature LayerNorm (eps=1e-5) is used.
def encoder_forward(padded_input, input_lengths, params, cfg):
    x = padded_input.astype(jnp.float32)

    # Input normalization (time axis, unbiased std, exact division). Done in
    # XLA so it fuses with the im2col front-end instead of paying a dedicated
    # tiny pallas_call launch.
    mean = jnp.mean(x, axis=1, keepdims=True)
    std = jnp.std(x, axis=1, keepdims=True, ddof=1)
    x = (x - mean) / (std + 1e-5)

    sp = params["subsampling"]
    x4 = x[:, None, :, :]                                           # (B, 1, T, F)
    x4 = conv2d_relu_im2col(x4, sp["conv1_w"], sp["conv1_b"], sp["k1"], sp["s1"])
    x4 = conv2d_relu_im2col(x4, sp["conv2_w"], sp["conv2_b"], sp["k2"], sp["s2"])
    B, C, Tp, Fp = x4.shape
    x2 = x4.transpose(0, 2, 1, 3).reshape(B * Tp, C * Fp)           # (B*T', C*F')
    # fused: subsampling fc + encoder fc (dropout = identity in eval mode)
    x2 = double_mm(x2, sp["fc_w"], sp["fc_b"], params["fc_w"], params["fc_b"])

    l = (input_lengths - sp["k1"]) // sp["s1"] + 1
    sub_lengths = (l - sp["k2"]) // sp["s2"] + 1

    # tiny (B, T') key-length bias; the causal window part is built in-kernel
    key_bias = jnp.where(jnp.arange(Tp)[None, :] < sub_lengths[:, None],
                         0.0, -1e9).astype(jnp.float32)

    for blk in params["adapter_blocks"]:
        x2 = conformer_block_call(x2, key_bias, blk,
                                  num_heads=cfg["mha_num_heads"],
                                  num_prev=cfg["num_previous_frames"],
                                  batch=B, seq=Tp)
    for blk in params["conformer_blocks"]:
        x2 = conformer_block_call(x2, key_bias, blk,
                                  num_heads=cfg["mha_num_heads"],
                                  num_prev=cfg["num_previous_frames"],
                                  batch=B, seq=Tp)

    D = cfg["subsampled_input_size"]
    return x2.reshape(B, Tp, D), sub_lengths


# --------------------------- parameter init --------------------------------

def _key_gen(key):
    state = [key]
    def nk():
        state[0], sub = jax.random.split(state[0])
        return sub
    return nk


def _dense(nk, din, dout, scale=0.05):
    # matmul weights pre-cast to bf16 (host-side, once); biases stay f32 (1, N)
    w = (scale * jax.random.normal(nk(), (din, dout), jnp.float32)).astype(jnp.bfloat16)
    b = jnp.zeros((1, dout), jnp.float32)
    return w, b


def _ones(n):
    return jnp.ones((1, n), jnp.float32)


def _zeros(n):
    return jnp.zeros((1, n), jnp.float32)


def _init_ff(nk, d, h):
    w1, b1 = _dense(nk, d, h)
    w2, b2 = _dense(nk, h, d)
    return {"g": _ones(d), "b": _zeros(d), "w1": w1, "b1": b1, "w2": w2, "b2": b2}


def _init_mha(nk, d):
    wq, bq = _dense(nk, d, d)
    wk, bk = _dense(nk, d, d)
    wv, bv = _dense(nk, d, d)
    wo, bo = _dense(nk, d, d)
    return {"g": _ones(d), "b": _zeros(d),
            "wqkv": jnp.concatenate([wq, wk, wv], axis=1),          # fused (D, 3D)
            "bqkv": jnp.concatenate([bq, bk, bv], axis=1),
            "wo": wo, "bo": bo}


def _init_conv(nk, d, ch, ksize):
    pw1_w, pw1_b = _dense(nk, d, 2 * ch)
    pw2_w, pw2_b = _dense(nk, ch, d)
    return {"g": _ones(d), "b": _zeros(d),
            "pw1_w": pw1_w, "pw1_b": pw1_b,
            "dw_w": 0.1 * jax.random.normal(nk(), (ksize, ch), jnp.float32),
            "dw_b": _zeros(ch),
            "g2": _ones(ch), "b2": _zeros(ch),
            "pw2_w": pw2_w, "pw2_b": pw2_b}


def _init_block(nk, cfg, with_adapter):
    d = cfg["subsampled_input_size"]
    p = {"ff1": _init_ff(nk, d, cfg["ff_hidden_size"]),
         "mha": _init_mha(nk, d),
         "conv": _init_conv(nk, d, cfg["conv_hidden_size"], cfg["conv_kernel_size"]),
         "ff2": _init_ff(nk, d, cfg["ff_hidden_size"]),
         "ln_f_g": _ones(d), "ln_f_b": _zeros(d)}
    if with_adapter:
        wd, bd = _dense(nk, d, cfg["adapter_hidden_size"])
        wu, bu = _dense(nk, cfg["adapter_hidden_size"], d)
        p["adapter"] = {"wd": wd, "bd": bd, "wu": wu, "bu": bu}
    return p


def init_params(key, cfg):
    nk = _key_gen(key)
    d = cfg["subsampled_input_size"]
    F = cfg["input_size"]
    k1, s1, k2, s2 = cfg["k1"], cfg["s1"], cfg["k2"], cfg["s2"]
    F1 = (F - k1) // s1 + 1
    F2 = (F1 - k2) // s2 + 1
    conv1_w, conv1_b = _dense(nk, 1 * k1 * k1, d)      # im2col weight matrices
    conv2_w, conv2_b = _dense(nk, d * k2 * k2, d)
    fc_sub_w, fc_sub_b = _dense(nk, d * F2, d)
    sub = {"conv1_w": conv1_w, "conv1_b": conv1_b,
           "conv2_w": conv2_w, "conv2_b": conv2_b,
           "fc_w": fc_sub_w, "fc_b": fc_sub_b,
           "k1": k1, "s1": s1, "k2": k2, "s2": s2}
    fc_w, fc_b = _dense(nk, d, d)
    n_adapter = cfg["num_adapter_blocks"]
    n_plain = cfg["num_conformer_blocks"] - n_adapter
    return {"subsampling": sub, "fc_w": fc_w, "fc_b": fc_b,
            "adapter_blocks": [_init_block(nk, cfg, True) for _ in range(n_adapter)],
            "conformer_blocks": [_init_block(nk, cfg, False) for _ in range(n_plain)]}


# --------------------------------- main -------------------------------------

if __name__ == "__main__":
    cfg = dict(
        input_size=16,
        subsampled_input_size=32,
        num_conformer_blocks=2,
        ff_hidden_size=64,
        conv_hidden_size=32,
        conv_kernel_size=3,
        mha_num_heads=4,
        dropout=0.0,
        k1=3, s1=2, k2=3, s2=2,
        num_previous_frames=4,
        is_timewise_ln=True,
        adapter_hidden_size=16,
        num_adapter_blocks=1,
    )
    B, T = 2, 32

    key = jax.random.PRNGKey(0)
    kp, kx = jax.random.split(key)
    params = init_params(kp, cfg)

    padded_input = jax.random.normal(kx, (B, T, cfg["input_size"]), jnp.float32)
    input_lengths = jnp.array([32, 28], dtype=jnp.int32)

    out, out_lengths = encoder_forward(padded_input, input_lengths, params, cfg)
    jax.block_until_ready(out)
    jax.block_until_ready(out_lengths)

    assert out.shape == (B, 7, cfg["subsampled_input_size"]), out.shape
    assert bool(jnp.all(jnp.isfinite(out)))
    print("KERNEL_OK")
</pallas_src>

<mosaic_0001>
module attributes {stable_mosaic.version = 11 : i64} {
  func.func @_mm_act_kernel(%arg0: memref<210x9xf32, #tpu.memory_space<vmem>>, %arg1: memref<9x32xbf16, #tpu.memory_space<vmem>>, %arg2: memref<1x32xf32, #tpu.memory_space<vmem>>, %arg3: memref<210x32xf32, #tpu.memory_space<vmem>>) attributes {dimension_semantics = [], scalar_prefetch = 0 : i64, scratch_operands = 0 : i64, tpu.core_type = #tpu.core_type<tc>} {
    %c0 = arith.constant 0 : index
    %c0_0 = arith.constant 0 : index
    %0 = vector.load %arg0[%c0, %c0_0] : memref<210x9xf32, #tpu.memory_space<vmem>>, vector<210x9xf32>
    %c0_1 = arith.constant 0 : index
    %c0_2 = arith.constant 0 : index
    %1 = vector.load %arg1[%c0_1, %c0_2] : memref<9x32xbf16, #tpu.memory_space<vmem>>, vector<9x32xbf16>
    %2 = arith.truncf %0 : vector<210x9xf32> to vector<210x9xbf16>
    %cst = arith.constant dense<0.000000e+00> : vector<210x32xf32>
    %3 = tpu.matmul %2, %1, %cst {dimension_numbers = #tpu.dot_dimension_numbers<[1], [0], [0], [1], [0, 0, 1, 1], [], []>} : vector<210x9xbf16>, vector<9x32xbf16>, vector<210x32xf32> -> vector<210x32xf32>
    %c0_3 = arith.constant 0 : index
    %c0_4 = arith.constant 0 : index
    %4 = vector.load %arg2[%c0_3, %c0_4] : memref<1x32xf32, #tpu.memory_space<vmem>>, vector<1x32xf32>
    %5 = vector.broadcast %4 : vector<1x32xf32> to vector<210x32xf32>
    %6 = arith.addf %3, %5 : vector<210x32xf32>
    %cst_5 = arith.constant 0.000000e+00 : f32
    %7 = vector.broadcast %cst_5 : f32 to vector<210x32xf32>
    %8 = arith.maximumf %6, %7 : vector<210x32xf32>
    %c0_6 = arith.constant 0 : index
    %c0_7 = arith.constant 0 : index
    %9 = vector.load %arg3[%c0_6, %c0_7] : memref<210x32xf32, #tpu.memory_space<vmem>>, vector<210x32xf32>
    tpu.vector_store %arg3[%c0_6, %c0_7], %8 {strides = array<i32>} : memref<210x32xf32, #tpu.memory_space<vmem>>, vector<210x32xf32>,
    return
  }
}

</mosaic_0001>

<bundles_post_ra>
// kernel: tpu_custom_call.1
= control target key start
LH: loop header
LB: loop body
LE: loop exit
PB: predicated region body
PF: predicated region fallthrough
CT: control target
= control target key end

     0   :  { %vm113_vm0 = vcmask 1043456   ;;  %vm114_vm1 = vcmask 1044480   ;;  %v389_v1 = vmov 65535   ;;  %vm70_vm2 = vcmask 72704   ;;  %s647_s1 = inlined_call_operand.vmem [shape: bf16[9,32], index: 1, kind: input, shape index: {}]   ;;  %s648_s0 = inlined_call_operand.vmem [shape: f32[210,9], index: 0, kind: input, shape index: {}]   ;;  %s649_s2 = inlined_call_operand.vmem [shape: f32[1,32], index: 2, kind: input, shape index: {}]   ;;  %s650_s3 = inlined_call_operand.vmem [shape: f32[210,32], index: 3, kind: output, shape index: {}]  }
   0x1   :  { %v388_v0 = vld [vmem:[%s647_s1] sm:$0x1f]   ;;  %v115_v2 = vsel %vm113_vm0, 4294967295, %v389_v1  ;;  %v16_v4 = vld [vmem:[%s648_s0 + $0x8] sm:$0xff]  ;;  %v17_v5 = vld [vmem:[%s648_s0 + $0x10] sm:$0xff]  ;;  %vm291_vm3 = vcmask 261120  }
   0x2   :  { %v15_v3 = vld [vmem:[%s648_s0] sm:$0xff]  ;;  %v116_v6 = vsel %vm114_vm1, %v115_v2, 0  ;;  %v18_v8 = vld [vmem:[%s648_s0 + $0x18] sm:$0xff]  ;;  %v32_v10 = vld [vmem:[%s648_s0 + $0x88] sm:$0xff]  ;;  %vm318_vm4 = vcmask 254976  }
   0x3   :  { %v44_v7 = vpack.c.bf16 %v16_v4, %v15_v3  ;;  %v31_v9 = vld [vmem:[%s648_s0 + $0x80] sm:$0xff]  ;;  %v118_v11 = vand.u32 %v388_v0, %v116_v6  ;;  %v33_v13 = vld [vmem:[%s648_s0 + $0x90] sm:$0xff]  ;;  %v34_v14 = vld [vmem:[%s648_s0 + $0x98] sm:$0xff]  ;;  %v45_v17 = vpack.c.bf16 %v18_v8, %v17_v5 }
   0x4   :  { %v52_v12 = vpack.c.bf16 %v32_v10, %v31_v9  ;;  %v19_v15 = vld [vmem:[%s648_s0 + $0x20] sm:$0xff]  ;;  %v20_v16 = vld [vmem:[%s648_s0 + $0x28] sm:$0xff]  ;;  %v53_v18 = vpack.c.bf16 %v34_v14, %v33_v13  ;;  %v21_v23 = vld [vmem:[%s648_s0 + $0x30] sm:$0xff] }
   0x5   :  { %357 = vmatprep.mubr.msk.bf16.mxu0 %vm70_vm2, %v44_v7  ;;  %355 = vmatprep.subr.bf16.mxu0 %v118_v11  ;;  %v35_v19 = vld [vmem:[%s648_s0 + $0xa0] sm:$0xff]  ;;  %v36_v20 = vld [vmem:[%s648_s0 + $0xa8] sm:$0xff]  ;;  %v46_v21 = vpack.c.bf16 %v20_v16, %v19_v15  ;;  %v22_v24 = vld [vmem:[%s648_s0 + $0x38] sm:$0xff] }
   0x6   :  { %385 = vmatprep.subr.bf16.mxu1 %v118_v11  ;;  %356 = vmatpush3.bf16.msra.mxu0 %v118_v11  ;;  %v54_v22 = vpack.c.bf16 %v36_v20, %v35_v19  ;;  %v37_v25 = vld [vmem:[%s648_s0 + $0xb0] sm:$0xff]  ;;  %v38_v26 = vld [vmem:[%s648_s0 + $0xb8] sm:$0xff]  ;;  %v23_v27 = vld [vmem:[%s648_s0 + $0x40] sm:$0xff]  ;;  %v47_v31 = vpack.c.bf16 %v22_v24, %v21_v23 }
   0x7   :  { %386 = vmatpush3.bf16.msra.mxu1 %v118_v11  ;;  %373 = vmatprep.mubr.msk.bf16.mxu1 %vm70_vm2, %v52_v12  ;;  %v24_v28 = vld [vmem:[%s648_s0 + $0x48] sm:$0xff]  ;;  %v39_v29 = vld [vmem:[%s648_s0 + $0xc0] sm:$0xff]  ;;  %v55_v32 = vpack.c.bf16 %v38_v26, %v37_v25  ;;  %v25_v35 = vld [vmem:[%s648_s0 + $0x50] sm:$0xff] }
   0x8   :  { %v40_v30 = vld [vmem:[%s648_s0 + $0xc8] sm:$0xff]  ;;  %v48_v33 = vpack.c.bf16 %v24_v28, %v23_v27  ;;  %v26_v36 = vld [vmem:[%s648_s0 + $0x58] sm:$0xff]  ;;  %v41_v37 = vld [vmem:[%s648_s0 + $0xd0] sm:$0x3] }
   0x9   :  { %358 = vmatmul.mubr.msk.bf16.vlgmr.msra.gmra.mrb[0].mxu0 %vm70_vm2, %v45_v17  ;;  %v56_v34 = vpack.c.bf16 %v40_v30, %v39_v29  ;;  %v27_v38 = vld [vmem:[%s648_s0 + $0x60] sm:$0xff]  ;;  %v28_v39 = vld [vmem:[%s648_s0 + $0x68] sm:$0xff]  ;;  %v49_v40 = vpack.c.bf16 %v26_v36, %v25_v35  ;;  %v57_v41 = vpack.c.bf16 %v41_v37, %v41_v37  ;;  %v29_v43 = vld [vmem:[%s648_s0 + $0x70] sm:$0xff] }
   0xa   :  { %374 = vmatmul.mubr.msk.bf16.vlgmr.msra.gmra.mrb[0].mxu1 %vm70_vm2, %v53_v18  ;;  %361 = vmatprep.mubr.msk.bf16.mxu0 %vm70_vm2, %v46_v21  ;;  %v50_v42 = vpack.c.bf16 %v28_v39, %v27_v38  ;;  %v30_v44 = vld [vmem:[%s648_s0 + $0x78] sm:$0xff]  ;;  %v511_v46 = vld [vmem:[%s649_s2] ss:$0 sm:$0xff] }
   0xb   :  { %377 = vmatprep.mubr.msk.bf16.mxu1 %vm70_vm2, %v54_v22  ;;  %v51_v45 = vpack.c.bf16 %v30_v44, %v29_v43 }
  0x11   :  { %362 = vmatmul.mubr.msk.bf16.gmra.mrb[4].mxu0 %vm70_vm2, %v47_v31 }
  0x12   :  { %378 = vmatmul.mubr.msk.bf16.gmra.mrb[4].mxu1 %vm70_vm2, %v55_v32  ;;  %365 = vmatprep.mubr.msk.bf16.mxu0 %vm70_vm2, %v48_v33 }
  0x13   :  { %381 = vmatprep.mubr.msk.bf16.mxu1 %vm70_vm2, %v56_v34 }
  0x19   :  { %366 = vmatmul.mubr.msk.bf16.gmra.mrb[8].mxu0 %vm70_vm2, %v49_v40 }
  0x1a   :  { %382 = vmatmul.mubr.msk.bf16.gmra.mrb[8].mxu1 %vm70_vm2, %v57_v41  ;;  %369 = vmatprep.mubr.msk.bf16.mxu0 %vm70_vm2, %v50_v42 }
  0x21   :  { %370 = vmatmul.mubr.msk.bf16.gmra.mrb[12].mxu0 %vm70_vm2, %v51_v45 }
  0xdc   :  { %v359_v47 = vpop.f32.mrb[0].mxu0 }
  0xdd   :  { %v375_v48 = vpop.f32.mrb[0].mxu1  ;;  %v163_v49 = vadd.f32 %v359_v47, %v511_v46  ;;  %v154_v50 = vpop.f32.mrb[1].mxu0 }
  0xde   :  { %v227_v51 = vadd.f32 %v375_v48, %v511_v46  ;;  %v218_v52 = vpop.f32.mrb[1].mxu1  ;;  %v155_v53 = vadd.f32 %v511_v46, %v154_v50  ;;  %v360_v54 = vpop.f32.mrb[2].mxu0 }
  0xdf   :  { %v219_v55 = vadd.f32 %v511_v46, %v218_v52  ;;  %v376_v56 = vpop.f32.mrb[2].mxu1  ;;  %v266_v57 = vmax.f32 %v163_v49, 0.0  ;;  %v166_v58 = vadd.f32 %v360_v54, %v511_v46  ;;  %v157_v59 = vpop.f32.mrb[3].mxu0 }
  0xe0   :  { %v282_v60 = vmax.f32 %v227_v51, 0.0  ;;  %v230_v61 = vadd.f32 %v376_v56, %v511_v46  ;;  %v221_v62 = vpop.f32.mrb[3].mxu1  ;;  %v264_v63 = vmax.f32 %v155_v53, 0.0  ;;  %v158_v0 = vadd.f32 %v511_v46, %v157_v59 }
  0xe1   :  { %v280_v1 = vmax.f32 %v219_v55, 0.0  ;;  %v222_v2 = vadd.f32 %v511_v46, %v221_v62  ;;  %294 = vst.msk [vmem:[%s650_s3 + $0x10] sm:$0xff] %vm291_vm3, %v266_v57  ;;  %v267_v3 = vmax.f32 %v166_v58, 0.0 }
  0xe2   :  { %310 = vst.msk [vmem:[%s650_s3 + $0x90] sm:$0xff] %vm291_vm3, %v282_v60  ;;  %v283_v4 = vmax.f32 %v230_v61, 0.0  ;;  %292 = vst.msk [vmem:[%s650_s3] sm:$0xff] %vm291_vm3, %v264_v63  ;;  %v265_v5 = vmax.f32 %v158_v0, 0.0 }
  0xe3   :  { %308 = vst.msk [vmem:[%s650_s3 + $0x80] sm:$0xff] %vm291_vm3, %v280_v1  ;;  %v281_v6 = vmax.f32 %v222_v2, 0.0  ;;  %295 = vst.msk [vmem:[%s650_s3 + $0x18] sm:$0xff] %vm291_vm3, %v267_v3 }
  0xe4   :  { %311 = vst.msk [vmem:[%s650_s3 + $0x98] sm:$0xff] %vm291_vm3, %v283_v4  ;;  %293 = vst.msk [vmem:[%s650_s3 + $0x8] sm:$0xff] %vm291_vm3, %v265_v5  ;;  %v363_v7 = vpop.f32.mrb[4].mxu0 }
  0xe5   :  { %309 = vst.msk [vmem:[%s650_s3 + $0x88] sm:$0xff] %vm291_vm3, %v281_v6  ;;  %v379_v8 = vpop.f32.mrb[4].mxu1  ;;  %v179_v9 = vadd.f32 %v363_v7, %v511_v46  ;;  %v170_v10 = vpop.f32.mrb[5].mxu0 }
  0xe6   :  { %v243_v11 = vadd.f32 %v379_v8, %v511_v46  ;;  %v234_v12 = vpop.f32.mrb[5].mxu1  ;;  %v171_v13 = vadd.f32 %v511_v46, %v170_v10  ;;  %v364_v14 = vpop.f32.mrb[6].mxu0 }
  0xe7   :  { %v235_v15 = vadd.f32 %v511_v46, %v234_v12  ;;  %v380_v16 = vpop.f32.mrb[6].mxu1  ;;  %v270_v17 = vmax.f32 %v179_v9, 0.0  ;;  %v182_v18 = vadd.f32 %v364_v14, %v511_v46  ;;  %v173_v19 = vpop.f32.mrb[7].mxu0 }
  0xe8   :  { %v286_v20 = vmax.f32 %v243_v11, 0.0  ;;  %v246_v21 = vadd.f32 %v380_v16, %v511_v46  ;;  %v237_v22 = vpop.f32.mrb[7].mxu1  ;;  %v268_v23 = vmax.f32 %v171_v13, 0.0  ;;  %v174_v24 = vadd.f32 %v511_v46, %v173_v19 }
  0xe9   :  { %v284_v25 = vmax.f32 %v235_v15, 0.0  ;;  %v238_v26 = vadd.f32 %v511_v46, %v237_v22  ;;  %298 = vst.msk [vmem:[%s650_s3 + $0x30] sm:$0xff] %vm291_vm3, %v270_v17  ;;  %v271_v27 = vmax.f32 %v182_v18, 0.0 }
  0xea   :  { %314 = vst.msk [vmem:[%s650_s3 + $0xb0] sm:$0xff] %vm291_vm3, %v286_v20  ;;  %v287_v28 = vmax.f32 %v246_v21, 0.0  ;;  %296 = vst.msk [vmem:[%s650_s3 + $0x20] sm:$0xff] %vm291_vm3, %v268_v23  ;;  %v269_v29 = vmax.f32 %v174_v24, 0.0 }
  0xeb   :  { %312 = vst.msk [vmem:[%s650_s3 + $0xa0] sm:$0xff] %vm291_vm3, %v284_v25  ;;  %v285_v30 = vmax.f32 %v238_v26, 0.0  ;;  %299 = vst.msk [vmem:[%s650_s3 + $0x38] sm:$0xff] %vm291_vm3, %v271_v27 }
  0xec   :  { %315 = vst.msk [vmem:[%s650_s3 + $0xb8] sm:$0xff] %vm291_vm3, %v287_v28  ;;  %297 = vst.msk [vmem:[%s650_s3 + $0x28] sm:$0xff] %vm291_vm3, %v269_v29  ;;  %v367_v31 = vpop.f32.mrb[8].mxu0 }
  0xed   :  { %313 = vst.msk [vmem:[%s650_s3 + $0xa8] sm:$0xff] %vm291_vm3, %v285_v30  ;;  %v383_v32 = vpop.f32.mrb[8].mxu1  ;;  %v195_v33 = vadd.f32 %v367_v31, %v511_v46  ;;  %v186_v34 = vpop.f32.mrb[9].mxu0 }
  0xee   :  { %v259_v35 = vadd.f32 %v383_v32, %v511_v46  ;;  %v250_v36 = vpop.f32.mrb[9].mxu1  ;;  %v187_v37 = vadd.f32 %v511_v46, %v186_v34  ;;  %v368_v38 = vpop.f32.mrb[10].mxu0 }
  0xef   :  { %v251_v39 = vadd.f32 %v511_v46, %v250_v36  ;;  %v384_v40 = vpop.f32.mrb[10].mxu1  ;;  %v274_v41 = vmax.f32 %v195_v33, 0.0  ;;  %v198_v42 = vadd.f32 %v368_v38, %v511_v46  ;;  %v189_v43 = vpop.f32.mrb[11].mxu0 }
  0xf0   :  { %v290_v44 = vmax.f32 %v259_v35, 0.0  ;;  %v253_v45 = vpop.f32.mrb[11].mxu1  ;;  %v272_v47 = vmax.f32 %v187_v37, 0.0  ;;  %v190_v48 = vadd.f32 %v511_v46, %v189_v43 }
  0xf1   :  { %v288_v49 = vmax.f32 %v251_v39, 0.0  ;;  %v254_v50 = vadd.f32 %v511_v46, %v253_v45  ;;  %302 = vst.msk [vmem:[%s650_s3 + $0x50] sm:$0xff] %vm291_vm3, %v274_v41  ;;  %v275_v51 = vmax.f32 %v198_v42, 0.0 }
  0xf2   :  { %319 = vst.msk [vmem:[%s650_s3 + $0xd0] sm:$0x3] %vm318_vm4, %v290_v44  ;;  %v273_v52 = vmax.f32 %v190_v48, 0.0 }
  0xf3   :  { %300 = vst.msk [vmem:[%s650_s3 + $0x40] sm:$0xff] %vm291_vm3, %v272_v47  ;;  %316 = vst.msk [vmem:[%s650_s3 + $0xc0] sm:$0xff] %vm291_vm3, %v288_v49  ;;  %v289_v53 = vmax.f32 %v254_v50, 0.0 }
  0xf4   :  { %303 = vst.msk [vmem:[%s650_s3 + $0x58] sm:$0xff] %vm291_vm3, %v275_v51  ;;  %301 = vst.msk [vmem:[%s650_s3 + $0x48] sm:$0xff] %vm291_vm3, %v273_v52  ;;  %v371_v54 = vpop.f32.mrb[12].mxu0 }
  0xf5   :  { %317 = vst.msk [vmem:[%s650_s3 + $0xc8] sm:$0xff] %vm291_vm3, %v289_v53  ;;  %v211_v55 = vadd.f32 %v371_v54, %v511_v46  ;;  %v202_v56 = vpop.f32.mrb[13].mxu0 }
  0xf6   :  { %v203_v57 = vadd.f32 %v511_v46, %v202_v56  ;;  %v372_v58 = vpop.f32.mrb[14].mxu0 }
  0xf7   :  { %v278_v59 = vmax.f32 %v211_v55, 0.0  ;;  %v214_v60 = vadd.f32 %v372_v58, %v511_v46  ;;  %v205_v61 = vpop.f32.mrb[15].mxu0 }
  0xf8   :  { %v276_v62 = vmax.f32 %v203_v57, 0.0  ;;  %v206_v63 = vadd.f32 %v511_v46, %v205_v61 }
  0xf9   :  { %306 = vst.msk [vmem:[%s650_s3 + $0x70] sm:$0xff] %vm291_vm3, %v278_v59  ;;  %v279_v0 = vmax.f32 %v214_v60, 0.0 }
  0xfa   :  { %304 = vst.msk [vmem:[%s650_s3 + $0x60] sm:$0xff] %vm291_vm3, %v276_v62  ;;  %v277_v1 = vmax.f32 %v206_v63, 0.0 }
  0xfb   :  { %307 = vst.msk [vmem:[%s650_s3 + $0x78] sm:$0xff] %vm291_vm3, %v279_v0 }
  0xfc   :  { %305 = vst.msk [vmem:[%s650_s3 + $0x68] sm:$0xff] %vm291_vm3, %v277_v1 }

</bundles_post_ra>
